<compile_context>
chip_gen: v5e
topology: v5e:2x2
jax: 0.10.0
libtpu: 0.0.40
codegen_flags: <defaults>
</compile_context>

<pallas_src>
import functools
import math

import numpy as np
import jax
import jax.numpy as jnp
from jax.experimental import pallas as pl
from jax.experimental.pallas import tpu as pltpu


def _round_up(x: int, m: int) -> int:
    return ((x + m - 1) // m) * m


def _vmem_capacity_bytes() -> int:
    """Physical VMEM per TensorCore; conservative fallback = v7x (64 MiB)."""
    try:
        info = pltpu.get_tpu_info()
        for attr in ("vmem_capacity_bytes", "vmem_bytes", "vmem_size_bytes"):
            v = getattr(info, attr, None)
            if v:
                return int(v)
    except Exception:
        pass
    return 64 * 1024 * 1024


def _linear_kernel(x_ref, w_ref, b_ref, o_ref, *acc,
                   pre_act, post_act, k_rem, cast_dtype):
    """One (tm, tn) output tile; accumulates over the K grid axis if present."""
    single_k = len(acc) == 0

    xb = x_ref[...]
    if k_rem:
        # Last K block is partial: zero the out-of-bounds tail of the x tile so
        # garbage (possibly NaN) never enters the reduction (weight K-tail rows
        # are zero-padded on the parameter side).
        last_k = pl.program_id(2) == pl.num_programs(2) - 1
        col = jax.lax.broadcasted_iota(jnp.int32, xb.shape, 1)
        keep = jnp.logical_or(jnp.logical_not(last_k), col < k_rem)
        xb = jnp.where(keep, xb, jnp.zeros_like(xb))
    if pre_act:                      # order == ('act', 'linear')
        xb = jnp.maximum(xb, 0)
    if cast_dtype is not None:       # in-kernel cast (x read only once from HBM)
        xb = xb.astype(cast_dtype)

    psum = jnp.dot(xb, w_ref[...], preferred_element_type=jnp.float32)

    def _epilogue(acc_val):
        y = acc_val + b_ref[...].astype(jnp.float32)
        if post_act:                 # order == ('linear', 'act')
            y = jnp.maximum(y, 0.0)
        o_ref[...] = y.astype(o_ref.dtype)

    if single_k:
        _epilogue(psum)
    else:
        acc_ref = acc[0]

        @pl.when(pl.program_id(2) == 0)
        def _init():
            acc_ref[...] = jnp.zeros_like(acc_ref)

        acc_ref[...] += psum

        @pl.when(pl.program_id(2) == pl.num_programs(2) - 1)
        def _finalize():
            _epilogue(acc_ref[...])


def linear_module_forward(x, weight_t, bias, *, activate=True,
                          order=("linear", "act"),
                          tm=None, tn=None, tk=None,
                          compute_dtype="auto",
                          weight_resident_bytes=6 << 20):
    """Pallas implementation of LinearModule.forward.

    Args:
      x: (..., in_features) input (same (n, *, c) convention as nn.Linear).
      weight_t: (in_features, out_features) — transposed nn.Linear weight.
      bias: (out_features,) bias or None.
      activate: same semantics as the PyTorch forward's `activate` flag.
      order: ('linear','act') or ('act','linear'), as in the module.
      tm/tn/tk: tile overrides (None = generation-aware defaults).
      compute_dtype: "auto" (bf16 when x is f32 — the MXU fast path),
        or an explicit dtype; accumulation is always f32; output keeps x.dtype.
      weight_resident_bytes: VMEM budget under which the whole weight stays
        resident (single N/K block, x streamed along M only).
    Returns:
      (..., out_features), same dtype as x.
    """
    order = tuple(order)
    assert order in (("linear", "act"), ("act", "linear"))
    in_features, out_features = weight_t.shape
    orig_shape = x.shape
    assert orig_shape[-1] == in_features
    rows = int(math.prod(orig_shape[:-1]))
    out_dtype = x.dtype

    if rows == 0:
        return jnp.zeros((*orig_shape[:-1], out_features), dtype=out_dtype)

    pre_act = bool(activate) and order == ("act", "linear")
    post_act = bool(activate) and order == ("linear", "act")

    # ---- compute dtype (bf16 default for f32 inputs; f32 accumulation kept).
    if isinstance(compute_dtype, str) and compute_dtype == "auto":
        compute_dtype = jnp.bfloat16 if x.dtype == jnp.float32 else x.dtype
    compute_dtype = np.dtype(compute_dtype)

    # ---- generation-aware defaults (v5e/v6e: 128 MiB VMEM; v7x: 64 MiB).
    cap = _vmem_capacity_bytes()
    big_vmem = cap >= (96 << 20)
    if tm is None:
        tm = 512 if big_vmem else 256
    if tn is None:
        tn = 512 if big_vmem else 256
    if tk is None:
        tk = 512

    x2d = x.reshape(rows, in_features)
    if bias is None:
        bias = jnp.zeros((out_features,), dtype=jnp.float32)

    # ---- lane-pad N (parameter side only) -> dense stores, full MXU width.
    n_padded = _round_up(out_features, 128)
    w_item = compute_dtype.itemsize
    out_item = np.dtype(out_dtype).itemsize

    # ---- N / K tiling ------------------------------------------------------
    weight_bytes = in_features * n_padded * w_item
    resident = (weight_bytes <= weight_resident_bytes
                and in_features <= 4096 and n_padded <= 4096)
    if resident:
        # Whole weight resident in VMEM: one N block, one K block; the kernel
        # becomes a pure x-streaming loop over M.
        tk_eff, gk, k_rem = in_features, 1, 0
        tn_eff, gn = n_padded, 1
    else:
        if in_features % 128 != 0 and in_features <= tk:
            tk_eff = in_features          # single full-K block (legal full-dim)
        else:
            tk_eff = max(128, (min(tk, _round_up(in_features, 128)) // 128) * 128)
        gk = pl.cdiv(in_features, tk_eff)
        k_rem = in_features % tk_eff      # masked x tail on the last K step
        tn_eff = max(128, (min(tn, n_padded) // 128) * 128)
        gn = pl.cdiv(n_padded, tn_eff)    # ragged last N block handled by Pallas
    k_padded = gk * tk_eff

    # ---- pad parameters once (zeros along K keep the reduction exact).
    if (k_padded != in_features) or (n_padded != out_features):
        weight_t = jnp.pad(weight_t, ((0, k_padded - in_features),
                                      (0, n_padded - out_features)))
    if n_padded != out_features:
        bias = jnp.pad(bias, (0, n_padded - out_features))
    bias2d = bias.reshape(1, n_padded)
    if weight_t.dtype != compute_dtype:
        weight_t = weight_t.astype(compute_dtype)

    # ---- where to cast x: wrapper pass only pays off when x tiles are re-read.
    cast_in_kernel = None
    if x2d.dtype != compute_dtype:
        if gn > 1:
            x2d = x2d.astype(compute_dtype)
        else:
            cast_in_kernel = compute_dtype
    x_item = np.dtype(x2d.dtype).itemsize

    # ---- M tiling: packed-dtype sublane multiple; keep both v7x TCs busy.
    sub = 16 if compute_dtype == jnp.bfloat16 else 8
    tm_eff = _round_up(min(tm, _round_up(rows, sub)), sub)
    gm = pl.cdiv(rows, tm_eff)
    if gm * gn < 2 and rows > sub:
        tm_eff = _round_up(pl.cdiv(rows, 2), sub)
        gm = pl.cdiv(rows, tm_eff)

    # ---- VMEM budget: double-buffered tiles + f32 accumulator. Never clamp
    # below the computed requirement; stay under the physical cap.
    b_item = np.dtype(bias2d.dtype).itemsize
    tile_bytes = (tm_eff * tk_eff * x_item
                  + tk_eff * tn_eff * w_item
                  + tn_eff * b_item
                  + tm_eff * tn_eff * out_item)
    needed = 2 * tile_bytes + (0 if gk == 1 else tm_eff * tn_eff * 4)
    vmem_limit = int(min(max(needed + (4 << 20), 16 << 20),
                         max(needed + (2 << 20), cap - (8 << 20))))

    # Cost estimate on logical (unpadded) sizes.
    flops = 2 * rows * in_features * out_features
    bytes_accessed = (rows * in_features * x_item
                      + in_features * out_features * w_item
                      + out_features * b_item
                      + rows * out_features * out_item)

    kernel = functools.partial(_linear_kernel, pre_act=pre_act,
                               post_act=post_act, k_rem=int(k_rem),
                               cast_dtype=cast_in_kernel)
    scratch = [] if gk == 1 else [pltpu.VMEM((tm_eff, tn_eff), jnp.float32)]

    out2d = pl.pallas_call(
        kernel,
        out_shape=jax.ShapeDtypeStruct((rows, n_padded), out_dtype),
        grid_spec=pltpu.PrefetchScalarGridSpec(
            num_scalar_prefetch=0,
            grid=(gm, gn, gk),
            in_specs=[
                pl.BlockSpec((tm_eff, tk_eff), lambda i, j, k: (i, k)),
                pl.BlockSpec((tk_eff, tn_eff), lambda i, j, k: (k, j)),
                pl.BlockSpec((1, tn_eff), lambda i, j, k: (0, j)),
            ],
            out_specs=pl.BlockSpec((tm_eff, tn_eff), lambda i, j, k: (i, j)),
            scratch_shapes=scratch,
        ),
        compiler_params=pltpu.CompilerParams(
            dimension_semantics=("parallel", "parallel", "arbitrary"),
            vmem_limit_bytes=vmem_limit),
        cost_estimate=pl.CostEstimate(
            flops=flops, transcendentals=0, bytes_accessed=bytes_accessed),
    )(x2d, weight_t, bias2d)

    if n_padded != out_features:
        out2d = out2d[:, :out_features]
    return out2d.reshape(*orig_shape[:-1], out_features)


def init_linear_module_params(key, in_features, out_features,
                              weight_dtype=jnp.bfloat16, bias_dtype=jnp.float32):
    """Kaiming init matching LinearModule.init_weights (mmcv kaiming_init:
    nonlinearity='relu', a=0, mode='fan_out', normal dist, bias=0).
    Weight is stored transposed (in, out) and in bf16 by default so the kernel
    hits the MXU fast path without a per-call cast."""
    kw, _ = jax.random.split(key)
    std = math.sqrt(2.0 / out_features)
    weight_t = (std * jax.random.normal(kw, (in_features, out_features),
                                        dtype=jnp.float32)).astype(weight_dtype)
    bias = jnp.zeros((out_features,), dtype=bias_dtype)
    return weight_t, bias
    # TODO(synk): with_spectral_norm=True (power-iteration weight normalization)
    # is a training-time parameterization and is not implemented here.


if __name__ == "__main__":
    key = jax.random.PRNGKey(0)
    k_x, k_p, k_x2 = jax.random.split(key, 3)

    # Input shaped (n, *, c) like nn.Linear: (batch=2, seq=8, in_features=32).
    batch, seq, in_features, out_features = 2, 8, 32, 64
    x = jax.random.normal(k_x, (batch, seq, in_features), dtype=jnp.float32)
    weight_t, bias = init_linear_module_params(k_p, in_features, out_features)

    # Default path: bf16 compute, f32 accumulate, weight-resident fast path.
    out = jax.block_until_ready(
        linear_module_forward(x, weight_t, bias, activate=True))
    ref = jnp.maximum(
        jnp.dot(x.astype(jnp.bfloat16), weight_t,
                preferred_element_type=jnp.float32) + bias, 0.0).astype(x.dtype)
    assert out.shape == (batch, seq, out_features)
    assert jnp.allclose(out, ref, atol=2e-2, rtol=2e-2), "linear+act mismatch"

    # activate=False path (plain linear).
    out_lin = jax.block_until_ready(
        linear_module_forward(x, weight_t, bias, activate=False))
    ref_lin = (jnp.dot(x.astype(jnp.bfloat16), weight_t,
                       preferred_element_type=jnp.float32) + bias).astype(x.dtype)
    assert jnp.allclose(out_lin, ref_lin, atol=2e-2, rtol=2e-2), "linear mismatch"

    # order=('act','linear') path.
    out_al = jax.block_until_ready(
        linear_module_forward(x, weight_t, bias, activate=True,
                              order=("act", "linear")))
    ref_al = (jnp.dot(jnp.maximum(x, 0.0).astype(jnp.bfloat16), weight_t,
                      preferred_element_type=jnp.float32) + bias).astype(x.dtype)
    assert jnp.allclose(out_al, ref_al, atol=2e-2, rtol=2e-2), "act+linear mismatch"

    # Tiled multi-block path: ragged M (48), unaligned K (200 -> masked K tail,
    # zero-padded weight K), lane-padded N (96 -> 128). weight_resident_bytes=0
    # forces the streamed-weight path so the K-accumulation grid is exercised.
    M2, K2, N2 = 48, 200, 96
    x2 = jax.random.normal(k_x2, (M2, K2), dtype=jnp.float32)
    w2, b2 = init_linear_module_params(k_p, K2, N2)
    out2 = jax.block_until_ready(
        linear_module_forward(x2, w2, b2, activate=True,
                              tm=32, tn=128, tk=128, weight_resident_bytes=0))
    ref2 = jnp.maximum(
        jnp.dot(x2.astype(jnp.bfloat16), w2,
                preferred_element_type=jnp.float32) + b2, 0.0)
    assert out2.shape == (M2, N2)
    assert jnp.allclose(out2, ref2, atol=2e-2, rtol=2e-2), "tiled path mismatch"

    print("KERNEL_OK")
</pallas_src>

<mosaic_0001>
module attributes {stable_mosaic.version = 11 : i64} {
  func.func @_linear_kernel(%arg0: i32, %arg1: i32, %arg2: i32, %arg3: memref<16x32xf32, #tpu.memory_space<vmem>>, %arg4: memref<32x128xbf16, #tpu.memory_space<vmem>>, %arg5: memref<1x128xf32, #tpu.memory_space<vmem>>, %arg6: memref<16x128xf32, #tpu.memory_space<vmem>>) attributes {dimension_semantics = [#tpu.dimension_semantics<parallel>, #tpu.dimension_semantics<parallel>, #tpu.dimension_semantics<arbitrary>], iteration_bounds = array<i64: 1, 1, 1>, scalar_prefetch = 0 : i64, scratch_operands = 0 : i64, tpu.core_type = #tpu.core_type<tc>, window_params = [{transform_indices = @transform_0, window_bounds = array<i64: 16, 32>}, {transform_indices = @transform_1, window_bounds = array<i64: 32, 128>}, {transform_indices = @transform_2, window_bounds = array<i64: 1, 128>}, {transform_indices = @transform_3, window_bounds = array<i64: 16, 128>}]} {
    %c0 = arith.constant 0 : index
    %c0_0 = arith.constant 0 : index
    %0 = vector.load %arg3[%c0, %c0_0] : memref<16x32xf32, #tpu.memory_space<vmem>>, vector<16x32xf32>
    %1 = arith.truncf %0 : vector<16x32xf32> to vector<16x32xbf16>
    %c0_1 = arith.constant 0 : index
    %c0_2 = arith.constant 0 : index
    %2 = vector.load %arg4[%c0_1, %c0_2] : memref<32x128xbf16, #tpu.memory_space<vmem>>, vector<32x128xbf16>
    %cst = arith.constant dense<0.000000e+00> : vector<16x128xf32>
    %3 = tpu.matmul %1, %2, %cst {dimension_numbers = #tpu.dot_dimension_numbers<[1], [0], [0], [1], [0, 0, 1, 1], [], []>} : vector<16x32xbf16>, vector<32x128xbf16>, vector<16x128xf32> -> vector<16x128xf32>
    %c0_3 = arith.constant 0 : index
    %c0_4 = arith.constant 0 : index
    %4 = vector.load %arg5[%c0_3, %c0_4] : memref<1x128xf32, #tpu.memory_space<vmem>>, vector<1x128xf32>
    %5 = vector.broadcast %4 : vector<1x128xf32> to vector<16x128xf32>
    %6 = arith.addf %3, %5 : vector<16x128xf32>
    %cst_5 = arith.constant 0.000000e+00 : f32
    %7 = vector.broadcast %cst_5 : f32 to vector<16x128xf32>
    %8 = arith.maximumf %6, %7 : vector<16x128xf32>
    %c0_6 = arith.constant 0 : index
    %c0_7 = arith.constant 0 : index
    %9 = vector.load %arg6[%c0_6, %c0_7] : memref<16x128xf32, #tpu.memory_space<vmem>>, vector<16x128xf32>
    tpu.vector_store %arg6[%c0_6, %c0_7], %8 {strides = array<i32>} : memref<16x128xf32, #tpu.memory_space<vmem>>, vector<16x128xf32>,
    return
  }
  func.func @transform_0(%arg0: i32, %arg1: i32, %arg2: i32) -> (i32, i32) {
    %c0_i32 = arith.constant 0 : i32
    return %arg0, %arg2 : i32, i32
  }
  func.func @transform_1(%arg0: i32, %arg1: i32, %arg2: i32) -> (i32, i32) {
    %c0_i32 = arith.constant 0 : i32
    return %arg2, %arg1 : i32, i32
  }
  func.func @transform_2(%arg0: i32, %arg1: i32, %arg2: i32) -> (i32, i32) {
    %c0_i32 = arith.constant 0 : i32
    %c0_i32_0 = arith.constant 0 : i32
    return %c0_i32, %arg1 : i32, i32
  }
  func.func @transform_3(%arg0: i32, %arg1: i32, %arg2: i32) -> (i32, i32) {
    %c0_i32 = arith.constant 0 : i32
    return %arg0, %arg1 : i32, i32
  }
}

</mosaic_0001>

<bundles_post_ra>
// kernel: tpu_custom_call.1
= control target key start
LH: loop header
LB: loop body
LE: loop exit
PB: predicated region body
PF: predicated region fallthrough
CT: control target
= control target key end

     0   :  { %8 = vsyncpa [#allocation3], 0  ;;  %s255_s0 = inlined_call_operand.hbm [shape: f32[16,32], index: 0, kind: input, shape index: {}]   ;;  %s256_s1 = inlined_call_operand.hbm [shape: bf16[32,128], index: 1, kind: input, shape index: {}]   ;;  %s257_s2 = inlined_call_operand.vmem [shape: f32[1,128], index: 2, kind: input, shape index: {}]   ;;  %s258_s3 = inlined_call_operand.hbm [shape: f32[16,128], index: 3, kind: output, shape index: {}]  }
   0x1   :  { %9 = vsyncpa [#allocation6], 0 }
   0x2   :  { %10 = vsyncpa [#allocation4], 0  ;;  %s15_s14 = sshll.u32 %s255_s0, 4  ;;  %s210_s15 = smov [#allocation2]   ;;  %s16_s14 = int_to_ptr.hbm [resolvable:$true] %s15_s14 }
   0x3   :  { %s17_s16 = sshll.u32 %s210_s15, 4  ;;  %s28_s19 = sshll.u32 %s256_s1, 4  ;;  %s18_s16 = int_to_ptr.vmem [resolvable:$true] %s17_s16  ;;  %s29_s19 = int_to_ptr.hbm [resolvable:$true] %s28_s19 }
   0x4   :  { %s211_s20 = smov 128   ;;  %s212_s21 = smov 8  }
   0x5   :  { %23 = dma.hbm_to_vmem [thread:$0]  %s16_s14, 256, %s18_s16, [#allocation3], %s211_s20, %s211_s20, %s212_s21  }
   0x6   :  { %s213_s22 = smov [#allocation5]   ;;  %s214_s24 = smov 64  }
   0x7   :  { %s30_s23 = sshll.u32 %s213_s22, 4  ;;  %s215_s0 = smov 4   ;;  %s31_s23 = int_to_ptr.vmem [resolvable:$true] %s30_s23 }
   0x8   :  { %36 = dma.hbm_to_vmem [thread:$0]  %s29_s19, 256, %s31_s23, [#allocation6], %s214_s24, %s214_s24, %s215_s0  }
   0x9   :  { %204 = dma.done.wait [#allocation3], 256  }
   0xa   :  { %205 = vsyncadd [#allocation3], 4294967040 }
   0xb   :  { %206 = dma.done.wait [#allocation6], 256  }
   0xc   :  { %207 = vsyncadd [#allocation6], 4294967040  ;;  %v123_v0 = vld [vmem:[#allocation5 + $0x8] sm:$0xff]  ;;  %v122_v1 = vld [vmem:[#allocation5] sm:$0xff]  ;;  %vm71_vm0 = vcmask 261120   ;;  %s216_s26 = smov [#allocation7]  }
   0xd   :  { %81 = vmatpush.bf16.msra.mxu0 %v123_v0  ;;  %v48_v2 = vld [vmem:[#allocation2] sm:$0xff]  ;;  %v49_v3 = vld [vmem:[#allocation2 + $0x8] sm:$0xff]  ;;  %s97_s27 = sshll.u32 %s216_s26, 4  ;;  %s99_s30 = sshll.u32 %s258_s3, 4  ;;  %s98_s27 = int_to_ptr.vmem [resolvable:$true] %s97_s27  ;;  %s100_s30 = int_to_ptr.hbm [resolvable:$true] %s99_s30 }
   0xe   :  { %v50_v4 = vpack.c.bf16 %v49_v3, %v48_v2  ;;  %v131_v5 = vld [vmem:[%s257_s2] ss:$0 sm:$0xff] }
  0x11   :  { %82 = vmatpush.bf16.msra.mxu0 %v122_v1 }
  0x14   :  { %121 = vmatmul.msk.bf16.vlgmr.msra.gmra.mxu0 %vm71_vm0, %v50_v4 }
  0x91   :  { %v84_v6 = vpop.f32.mrf.mxu0 }
  0x92   :  { %v85_v7 = vadd.f32 %v131_v5, %v84_v6 }
  0x94   :  { %v89_v8 = vmax.f32 %v85_v7, 0.0 }
  0x96   :  { %91 = vst [vmem:[#allocation7] sm:$0xff] %v89_v8 }
  0x99   :  { %v86_v9 = vpop.f32.mrf.mxu0 }
  0x9a   :  { %v87_v10 = vadd.f32 %v131_v5, %v86_v9 }
  0x9c   :  { %v90_v11 = vmax.f32 %v87_v10, 0.0 }
  0x9e   :  { %92 = vst [vmem:[#allocation7 + $0x8] sm:$0xff] %v90_v11 }
  0x9f   :  { %105 = dma.vmem_to_hbm [thread:$0]  %s98_s27, 256, %s100_s30, [#allocation4], %s211_s20, %s211_s20, %s212_s21  }
  0xa0   :  { %208 = dma.done.wait [#allocation4], 256  }
  0xa1   :  { %209 = vsyncadd [#allocation4], 4294967040 }
  0xa2   :  { %110 = vsyncpa [#allocation3], 1 }
  0xa3   :  { %111 = vsyncpa [#allocation6], 1 }
  0xa4   :  { %112 = vsyncpa [#allocation4], 1 }

</bundles_post_ra>
